<compile_context>
chip_gen: v7x
topology: tpu7x:2x2x1
jax: 0.10.0
libtpu: 0.0.40
codegen_flags: <defaults>
</compile_context>

<pallas_src>
import jax
import jax.numpy as jnp
from jax.experimental import pallas as pl
from jax.experimental.pallas import tpu as pltpu

_LANE = 128      # pad feature (lane-axis) dims to a multiple of this
_SUBLANE = 8     # pad node count (sublane axis) to a multiple of this


def _round_up(v, m):
    return (v + m - 1) // m * m


# ----------------------------- Pallas kernel --------------------------------
def gae_kernel(a_ref, x_ref, w1_ref, b1_ref, w2_ref, b2_ref, o_ref):
    # a_ref : (T, N, N)   normalized adjacencies, all timesteps
    # x_ref : (N, F)      node features (static over time), lane-padded
    # w1/b1 : (F, H), (1, H)   w2/b2 : (H, Z), (1, Z)   all lane-padded
    # o_ref : (T*N, Z)    lane-dense output slab
    t, n, _ = a_ref.shape
    z_p = w2_ref.shape[1]

    a = a_ref[...]                                          # (T, N, N)

    # Layer 1 (reassociated): aggregate first, then project.
    # Aggregation over all T timesteps is a single (T*N, N) @ (N, F) matmul.
    ax = jnp.dot(a.reshape(t * n, n), x_ref[...],
                 preferred_element_type=jnp.float32)        # (T*N, F)
    h = jnp.dot(ax, w1_ref[...],
                preferred_element_type=jnp.float32) + b1_ref[...]
    h = jnp.maximum(h, 0.0)                                 # (T*N, H)

    # Layer 2: project first (Z <= H), then aggregate per timestep.
    hw = jnp.dot(h, w2_ref[...],
                 preferred_element_type=jnp.float32)        # (T*N, Z)
    z = jnp.einsum('tnm,tmz->tnz', a, hw.reshape(t, n, z_p),
                   preferred_element_type=jnp.float32)      # (T, N, Z)
    o_ref[...] = z.reshape(t * n, z_p) + b2_ref[...]


def gae_forward(adj, x, w1, b1, w2, b2):
    """adj: [T, N, N] dense normalized adjacencies, x: [N, x_dim] -> [T, N, z_dim]."""
    T, N, _ = adj.shape
    x_dim, h_dim = w1.shape
    z_dim = w2.shape[1]

    # Pad node axis to a multiple of 8 sublanes, feature axes to 128 lanes.
    n_p = _round_up(N, _SUBLANE)
    f_p = _round_up(x_dim, _LANE)
    h_p = _round_up(h_dim, _LANE)
    z_p = _round_up(z_dim, _LANE)

    adj_p = jnp.pad(adj, ((0, 0), (0, n_p - N), (0, n_p - N)))
    x_p = jnp.pad(x, ((0, n_p - N), (0, f_p - x_dim)))
    w1_p = jnp.pad(w1, ((0, f_p - x_dim), (0, h_p - h_dim)))
    b1_p = jnp.pad(b1, ((0, 0), (0, h_p - h_dim)))
    w2_p = jnp.pad(w2, ((0, h_p - h_dim), (0, z_p - z_dim)))
    b2_p = jnp.pad(b2, ((0, 0), (0, z_p - z_dim)))

    flops = 2 * T * n_p * (n_p * f_p + f_p * h_p + h_p * z_p + n_p * z_p)
    bytes_accessed = 4 * (adj_p.size + x_p.size + w1_p.size + b1_p.size
                          + w2_p.size + b2_p.size + T * n_p * z_p)

    vmem = lambda: pl.BlockSpec(memory_space=pltpu.MemorySpace.VMEM)
    out_p = pl.pallas_call(
        gae_kernel,
        out_shape=jax.ShapeDtypeStruct((T * n_p, z_p), jnp.float32),
        in_specs=[vmem() for _ in range(6)],
        out_specs=vmem(),
        cost_estimate=pl.CostEstimate(flops=flops, transcendentals=0,
                                      bytes_accessed=bytes_accessed),
    )(adj_p, x_p, w1_p, b1_p, w2_p, b2_p)

    # TODO(synk): when N grows so that the full [T, N, N] adjacency no longer
    # fits VMEM (v7x: 64 MiB), switch to a grid over adjacency row-tiles
    # (BlockSpec((1, tm, N), ...)) with a matching row-tiled output and set
    # vmem_limit_bytes; at the sizes used here a single block is optimal.
    return out_p.reshape(T, n_p, z_p)[:, :N, :z_dim]


# ------------------------------- JAX glue ------------------------------------
def build_norm_adj(src, dst, ew, num_nodes):
    """GCNConv normalization: add self-loops (weight 1), symmetric D^-1/2 norm.

    Returns dense A_norm with A_norm[dst, src] = norm so that out = A_norm @ X
    matches PyG's target-side aggregation (flow='source_to_target').
    """
    n = num_nodes
    loops = jnp.arange(n, dtype=src.dtype)
    src_f = jnp.concatenate([src, loops])
    dst_f = jnp.concatenate([dst, loops])
    ew_f = jnp.concatenate([ew, jnp.ones((n,), dtype=ew.dtype)])

    deg = jnp.zeros((n,), dtype=ew.dtype).at[dst_f].add(ew_f)
    dinv = jnp.where(deg > 0, 1.0 / jnp.sqrt(deg), 0.0)
    norm = dinv[src_f] * ew_f * dinv[dst_f]

    A = jnp.zeros((n, n), dtype=ew.dtype).at[dst_f, src_f].add(norm)
    return A


def glorot(key, shape):
    fan_in, fan_out = shape
    limit = jnp.sqrt(6.0 / (fan_in + fan_out))
    return jax.random.uniform(key, shape, jnp.float32, -limit, limit)


def reference_forward(adj, x, w1, b1, w2, b2):
    def one(a):
        h = jnp.maximum(a @ (x @ w1) + b1, 0.0)
        return a @ (h @ w2) + b2
    return jax.vmap(one)(adj)


# --------------------------------- main --------------------------------------
if __name__ == "__main__":
    key = jax.random.PRNGKey(0)
    T, N, E = 3, 16, 40          # timesteps, nodes, edges per timestep
    x_dim, h_dim, z_dim = 8, 32, 16

    (k_x, k_src, k_dst, k_ew, k_mask, k_w1, k_w2) = jax.random.split(key, 7)

    # Static node features (data.dynamic_feats == False)
    x = jax.random.normal(k_x, (N, x_dim), jnp.float32)

    # Per-timestep edge lists, weights, and a train mask (ei_masked / ew_masked)
    src = jax.random.randint(k_src, (T, E), 0, N)
    dst = jax.random.randint(k_dst, (T, E), 0, N)
    ew = jax.random.uniform(k_ew, (T, E), jnp.float32, 0.1, 1.0)
    mask = (jax.random.uniform(k_mask, (T, E)) < 0.7).astype(jnp.float32)
    ew_masked = ew * mask  # zero-weight edge == removed edge for GCN norm

    # Dense normalized adjacencies (glue; the matmuls are the Pallas hot path)
    adj = jnp.stack([build_norm_adj(src[t], dst[t], ew_masked[t], N)
                     for t in range(T)])

    # GCNConv params: glorot weights, zero biases (deterministic init)
    w1 = glorot(k_w1, (x_dim, h_dim))
    b1 = jnp.zeros((1, h_dim), jnp.float32)
    w2 = glorot(k_w2, (h_dim, z_dim))
    b2 = jnp.zeros((1, z_dim), jnp.float32)

    zs = gae_forward(adj, x, w1, b1, w2, b2)
    zs = jax.block_until_ready(zs)

    ref = reference_forward(adj, x, w1, b1, w2, b2)
    assert zs.shape == (T, N, z_dim)
    assert jnp.allclose(zs, ref, atol=1e-4, rtol=1e-4)

    print("KERNEL_OK")
</pallas_src>

<mosaic_0001>
module attributes {stable_mosaic.version = 11 : i64} {
  func.func @gae_kernel(%arg0: memref<3x16x16xf32, #tpu.memory_space<vmem>>, %arg1: memref<16x128xf32, #tpu.memory_space<vmem>>, %arg2: memref<128x128xf32, #tpu.memory_space<vmem>>, %arg3: memref<1x128xf32, #tpu.memory_space<vmem>>, %arg4: memref<128x128xf32, #tpu.memory_space<vmem>>, %arg5: memref<1x128xf32, #tpu.memory_space<vmem>>, %arg6: memref<48x128xf32, #tpu.memory_space<vmem>>) attributes {dimension_semantics = [], scalar_prefetch = 0 : i64, scratch_operands = 0 : i64, tpu.core_type = #tpu.core_type<tc>} {
    %c0 = arith.constant 0 : index
    %c0_0 = arith.constant 0 : index
    %c0_1 = arith.constant 0 : index
    %0 = vector.load %arg0[%c0, %c0_0, %c0_1] : memref<3x16x16xf32, #tpu.memory_space<vmem>>, vector<3x16x16xf32>
    %1 = vector.shape_cast %0 : vector<3x16x16xf32> to vector<48x16xf32>
    %c0_2 = arith.constant 0 : index
    %c0_3 = arith.constant 0 : index
    %2 = vector.load %arg1[%c0_2, %c0_3] : memref<16x128xf32, #tpu.memory_space<vmem>>, vector<16x128xf32>
    %cst = arith.constant dense<0.000000e+00> : vector<48x128xf32>
    %3 = tpu.matmul %1, %2, %cst {dimension_numbers = #tpu.dot_dimension_numbers<[1], [0], [0], [1], [0, 0, 1, 1], [], []>} : vector<48x16xf32>, vector<16x128xf32>, vector<48x128xf32> -> vector<48x128xf32>
    %c0_4 = arith.constant 0 : index
    %c0_5 = arith.constant 0 : index
    %4 = vector.load %arg2[%c0_4, %c0_5] : memref<128x128xf32, #tpu.memory_space<vmem>>, vector<128x128xf32>
    %cst_6 = arith.constant dense<0.000000e+00> : vector<48x128xf32>
    %5 = tpu.matmul %3, %4, %cst_6 {dimension_numbers = #tpu.dot_dimension_numbers<[1], [0], [0], [1], [0, 0, 1, 1], [], []>} : vector<48x128xf32>, vector<128x128xf32>, vector<48x128xf32> -> vector<48x128xf32>
    %c0_7 = arith.constant 0 : index
    %c0_8 = arith.constant 0 : index
    %6 = vector.load %arg3[%c0_7, %c0_8] : memref<1x128xf32, #tpu.memory_space<vmem>>, vector<1x128xf32>
    %7 = vector.broadcast %6 : vector<1x128xf32> to vector<48x128xf32>
    %8 = arith.addf %5, %7 : vector<48x128xf32>
    %cst_9 = arith.constant 0.000000e+00 : f32
    %9 = vector.broadcast %cst_9 : f32 to vector<48x128xf32>
    %10 = arith.maximumf %8, %9 : vector<48x128xf32>
    %c0_10 = arith.constant 0 : index
    %c0_11 = arith.constant 0 : index
    %11 = vector.load %arg4[%c0_10, %c0_11] : memref<128x128xf32, #tpu.memory_space<vmem>>, vector<128x128xf32>
    %cst_12 = arith.constant dense<0.000000e+00> : vector<48x128xf32>
    %12 = tpu.matmul %10, %11, %cst_12 {dimension_numbers = #tpu.dot_dimension_numbers<[1], [0], [0], [1], [0, 0, 1, 1], [], []>} : vector<48x128xf32>, vector<128x128xf32>, vector<48x128xf32> -> vector<48x128xf32>
    %13 = vector.shape_cast %12 : vector<48x128xf32> to vector<3x16x128xf32>
    "tpu.trace_start"() <{level = 10 : i32, message = "tnm,tmz->tnz"}> : () -> ()
    %cst_13 = arith.constant dense<0.000000e+00> : vector<3x16x128xf32>
    %14 = tpu.matmul %0, %13, %cst_13 {dimension_numbers = #tpu.dot_dimension_numbers<[2], [1], [1], [2], [0, 0, 0, 1, 1, 2], [0], [0]>} : vector<3x16x16xf32>, vector<3x16x128xf32>, vector<3x16x128xf32> -> vector<3x16x128xf32>
    "tpu.trace_stop"() : () -> ()
    %15 = vector.shape_cast %14 : vector<3x16x128xf32> to vector<48x128xf32>
    %c0_14 = arith.constant 0 : index
    %c0_15 = arith.constant 0 : index
    %16 = vector.load %arg5[%c0_14, %c0_15] : memref<1x128xf32, #tpu.memory_space<vmem>>, vector<1x128xf32>
    %17 = vector.broadcast %16 : vector<1x128xf32> to vector<48x128xf32>
    %18 = arith.addf %15, %17 : vector<48x128xf32>
    %c0_16 = arith.constant 0 : index
    %c0_17 = arith.constant 0 : index
    %19 = vector.load %arg6[%c0_16, %c0_17] : memref<48x128xf32, #tpu.memory_space<vmem>>, vector<48x128xf32>
    tpu.vector_store %arg6[%c0_16, %c0_17], %18 {strides = array<i32>} : memref<48x128xf32, #tpu.memory_space<vmem>>, vector<48x128xf32>,
    return
  }
}

</mosaic_0001>

<bundles_post_ra>
// kernel: tpu_custom_call.1
= control target key start
LH: loop header
LB: loop body
LE: loop exit
PB: predicated region body
PF: predicated region fallthrough
CT: control target
= control target key end

     0   :  { %11 = vsyncpa [#allocation3], 0  ;;  %s1271_s0 = inlined_call_operand.hbm [shape: f32[3,16,16], index: 0, kind: input, shape index: {}]   ;;  %s1272_s1 = inlined_call_operand.hbm [shape: f32[16,128], index: 1, kind: input, shape index: {}]   ;;  %s1273_s2 = inlined_call_operand.hbm [shape: f32[128,128], index: 2, kind: input, shape index: {}]   ;;  %s1274_s3 = inlined_call_operand.vmem [shape: f32[1,128], index: 3, kind: input, shape index: {}]   ;;  %s1275_s4 = inlined_call_operand.hbm [shape: f32[128,128], index: 4, kind: input, shape index: {}]   ;;  %s1276_s5 = inlined_call_operand.vmem [shape: f32[1,128], index: 5, kind: input, shape index: {}]   ;;  %s1277_s6 = inlined_call_operand.hbm [shape: f32[48,128], index: 6, kind: output, shape index: {}]  }
   0x1   :  { %12 = vsyncpa [#allocation6], 0 }
   0x2   :  { %13 = vsyncpa [#allocation9], 0 }
   0x3   :  { %14 = vsyncpa [#allocation4], 0  ;;  %s1098_s21 = smov [#allocation5]   ;;  %s1099_s23 = smov [#allocation2]  }
   0x4   :  { %s32_s22 = sshll.u32 %s1098_s21, 4  ;;  %s20_s24 = sshll.u32 %s1099_s23, 4  ;;  %s33_s22 = int_to_ptr.vmem [resolvable:$true] %s32_s22  ;;  %s1140_s24 = int_to_ptr.vmem [resolvable:$true] %s20_s24 }
   0x5   :  { %s980_s27 = scalar_lea.hbm %s1272_s1, 256 }
   0x6   :  { %p981_p0 = scmp.ne.s32.totalorder %s1272_s1, %s980_s27  ;;  %p984_p1 = scmp.lt.u32.totalorder %s980_s27, %s1272_s1 }
   0x8   :  { %p986_p2 = pnand %p984_p1, %p981_p0 }
   0xa   :  { %989 = shalt.err (!%p986_p2)
}
   0xb   :  { %s990_s8 = scalar_lea.vmem %s33_s22, 256  ;;  %p995_p4 = scmp.lt.s32.totalorder %s33_s22, %s33_s22 }
   0xc   :  { %p991_p3 = scmp.ne.s32.totalorder %s33_s22, %s990_s8  ;;  %p996_p5 = scmp.lt.s32.totalorder %s990_s8, %s990_s8 }
   0xe   :  { %p997_p6 = por %p996_p5, %p995_p4 }
  0x10   :  { %p998_p7 = pnand %p997_p6, %p991_p3 }
  0x12   :  { %1001 = shalt.err (!%p998_p7)
}
  0x13   :  { %s1100_s9 = smov 128   ;;  %s1101_s10 = smov 8  }
  0x14   :  { %38 = dma.hbm_to_vmem [thread:$0]  %s1272_s1, 256, %s33_s22, [#allocation6], %s1100_s9, %s1100_s9, %s1101_s10  }
  0x15   :  { %s1002_s15 = scalar_lea.hbm %s1271_s0, 768 }
  0x16   :  { %p1003_p8 = scmp.ne.s32.totalorder %s1271_s0, %s1002_s15  ;;  %p1006_p9 = scmp.lt.u32.totalorder %s1002_s15, %s1271_s0 }
  0x18   :  { %p1008_p10 = pnand %p1006_p9, %p1003_p8 }
  0x1a   :  { %1011 = shalt.err (!%p1008_p10)
}
  0x1b   :  { %s1012_s20 = scalar_lea.vmem %s1140_s24, 768  ;;  %p1017_p12 = scmp.lt.s32.totalorder %s1140_s24, %s1140_s24 }
  0x1c   :  { %p1013_p11 = scmp.ne.s32.totalorder %s1140_s24, %s1012_s20  ;;  %p1018_p13 = scmp.lt.s32.totalorder %s1012_s20, %s1012_s20 }
  0x1e   :  { %p1019_p0 = por %p1018_p13, %p1017_p12 }
  0x20   :  { %p1020_p1 = pnand %p1019_p0, %p1013_p11 }
  0x22   :  { %1023 = shalt.err (!%p1020_p1)
}
  0x23   :  { %26 = dma.hbm_to_vmem [thread:$0]  %s1271_s0, 768, %s1140_s24, [#allocation3], %s1100_s9, %s1100_s9, %s1101_s10  }
  0x24   :  { %s1102_s22 = smov [#allocation7]   ;;  %s1103_s25 = smov [#allocation8]  }
  0x25   :  { %s44_s23 = sshll.u32 %s1102_s22, 4  ;;  %s58_s26 = sshll.u32 %s1103_s25, 4  ;;  %s45_s23 = int_to_ptr.vmem [resolvable:$true] %s44_s23  ;;  %s1177_s26 = int_to_ptr.vmem [resolvable:$true] %s58_s26 }
  0x26   :  { %s1024_s29 = scalar_lea.hbm %s1273_s2, 2048 }
  0x27   :  { %p1025_p2 = scmp.ne.s32.totalorder %s1273_s2, %s1024_s29  ;;  %p1028_p3 = scmp.lt.u32.totalorder %s1024_s29, %s1273_s2 }
  0x29   :  { %p1030_p4 = pnand %p1028_p3, %p1025_p2 }
  0x2b   :  { %1033 = shalt.err (!%p1030_p4)
}
  0x2c   :  { %s1034_s0 = scalar_lea.vmem %s45_s23, 2048  ;;  %p1039_p6 = scmp.lt.s32.totalorder %s45_s23, %s45_s23 }
  0x2d   :  { %p1035_p5 = scmp.ne.s32.totalorder %s45_s23, %s1034_s0  ;;  %p1040_p7 = scmp.lt.s32.totalorder %s1034_s0, %s1034_s0 }
  0x2f   :  { %p1041_p8 = por %p1040_p7, %p1039_p6 }
  0x31   :  { %p1042_p9 = pnand %p1041_p8, %p1035_p5 }
  0x33   :  { %1045 = shalt.err (!%p1042_p9)
}
  0x34   :  { %50 = dma.hbm_to_vmem [thread:$0]  %s1273_s2, 2048, %s45_s23, [#allocation6], %s1100_s9, %s1100_s9, %s1101_s10  }
  0x35   :  { %s1046_s15 = scalar_lea.hbm %s1275_s4, 2048 }
  0x36   :  { %p1047_p10 = scmp.ne.s32.totalorder %s1275_s4, %s1046_s15  ;;  %p1050_p11 = scmp.lt.u32.totalorder %s1046_s15, %s1275_s4 }
  0x38   :  { %p1052_p12 = pnand %p1050_p11, %p1047_p10 }
  0x3a   :  { %1055 = shalt.err (!%p1052_p12)
}
  0x3b   :  { %s1056_s20 = scalar_lea.vmem %s1177_s26, 2048  ;;  %p1061_p0 = scmp.lt.s32.totalorder %s1177_s26, %s1177_s26 }
  0x3c   :  { %p1057_p13 = scmp.ne.s32.totalorder %s1177_s26, %s1056_s20  ;;  %p1062_p1 = scmp.lt.s32.totalorder %s1056_s20, %s1056_s20 }
  0x3e   :  { %p1063_p2 = por %p1062_p1, %p1061_p0 }
  0x40   :  { %p1064_p3 = pnand %p1063_p2, %p1057_p13 }
  0x42   :  { %1067 = shalt.err (!%p1064_p3)
}
  0x43   :  { %64 = dma.hbm_to_vmem [thread:$0]  %s1275_s4, 2048, %s1177_s26, [#allocation9], %s1100_s9, %s1100_s9, %s1101_s10  }
  0x44   :  { %1090 = dma.done.wait [#allocation3], 768  }
  0x45   :  { %1091 = vsyncadd [#allocation3], 4294966528 }
  0x46   :  { %1092 = dma.done.wait [#allocation6], 2304  }
  0x47   :  { %1093 = vsyncadd [#allocation6], 4294964992 }
  0x48   :  { %1094 = dma.done.wait [#allocation9], 2048  }
  0x49   :  { %1095 = vsyncadd [#allocation9], 4294965248  ;;  %vm87_vm0 = vcmask 130048   ;;  %v85_v0 = vld [vmem:[#allocation5] sm:$0xff]  ;;  %v86_v1 = vld [vmem:[#allocation5 + $0x8] sm:$0xff]  ;;  %s1104_s23 = smov [#allocation10]  }
  0x4a   :  { %v1214_v2 = vld [vmem:[#allocation2] sm:$0xff]  ;;  %v893_v3 = vpack.c.bf16 %v86_v1, %v85_v0  ;;  %v202_v5 = vld [vmem:[#allocation7 + $0x8] sm:$0xff]  ;;  %v203_v6 = vld [vmem:[#allocation7 + $0x10] sm:$0xff]  ;;  %s685_s25 = sshll.u32 %s1104_s23, 4  ;;  %s686_s25 = int_to_ptr.vmem [resolvable:$true] %s685_s25 }
  0x4b   :  { %781 = vmatprep.mubr.msk.f32.mxu0 %vm87_vm0, %v1214_v2  ;;  %v201_v4 = vld [vmem:[#allocation7] sm:$0xff]  ;;  %v204_v7 = vld [vmem:[#allocation7 + $0x18] sm:$0xff]  ;;  %v1218_v8 = vld [vmem:[#allocation2 + $0x8] sm:$0xff]  ;;  %p1073_p5 = scmp.lt.s32.totalorder %s686_s25, %s686_s25 }
  0x4c   :  { %894 = vmatprep.subr.bf16.mxu0 %v893_v3  ;;  %v897_v9 = vpack.c.bf16 %v202_v5, %v201_v4  ;;  %v901_v10 = vpack.c.bf16 %v204_v7, %v203_v6  ;;  %v1220_v11 = vld [vmem:[#allocation2 + $0x10] sm:$0xff]  ;;  %v205_v12 = vld [vmem:[#allocation7 + $0x20] sm:$0xff]  ;;  %v206_v13 = vld [vmem:[#allocation7 + $0x28] sm:$0xff] }
  0x4d   :  { %896 = vmatpush3.bf16.msra.mxu0 %v893_v3  ;;  %v1226_v14 = vld [vmem:[#allocation2 + $0x18] sm:$0xff]  ;;  %v905_v15 = vpack.c.bf16 %v206_v13, %v205_v12  ;;  %v1228_v16 = vld [vmem:[#allocation2 + $0x20] sm:$0xff]  ;;  %v207_v17 = vld [vmem:[#allocation7 + $0x30] sm:$0xff] }
  0x4e   :  { %898 = vmatprep.subr.bf16.mxu1 %v897_v9  ;;  %v208_v18 = vld [vmem:[#allocation7 + $0x38] sm:$0xff]  ;;  %v1234_v19 = vld [vmem:[#allocation2 + $0x28] sm:$0xff]  ;;  %v209_v21 = vld [vmem:[#allocation7 + $0x40] sm:$0xff] }
  0x4f   :  { %900 = vmatpush3.bf16.msra.mxu1 %v897_v9  ;;  %v909_v20 = vpack.c.bf16 %v208_v18, %v207_v17  ;;  %v210_v22 = vld [vmem:[#allocation7 + $0x48] sm:$0xff]  ;;  %v211_v24 = vld [vmem:[#allocation7 + $0x50] sm:$0xff]  ;;  %v212_v25 = vld [vmem:[#allocation7 + $0x58] sm:$0xff] }
  0x50   :  { %782 = vmatmul.mubr.msk.f32.vlgmr.msra.gmra.mrb[0].mxu0 %vm87_vm0, %v1218_v8  ;;  %902 = vmatprep.subr.bf16.mxu1 %v901_v10  ;;  %v913_v23 = vpack.c.bf16 %v210_v22, %v209_v21  ;;  %v917_v26 = vpack.c.bf16 %v212_v25, %v211_v24  ;;  %v213_v27 = vld [vmem:[#allocation7 + $0x60] sm:$0xff]  ;;  %v214_v28 = vld [vmem:[#allocation7 + $0x68] sm:$0xff]  ;;  %v215_v30 = vld [vmem:[#allocation7 + $0x70] sm:$0xff] }
  0x51   :  { %784 = vmatprep.mubr.msk.f32.mxu0 %vm87_vm0, %v1220_v11  ;;  %v921_v29 = vpack.c.bf16 %v214_v28, %v213_v27  ;;  %v216_v31 = vld [vmem:[#allocation7 + $0x78] sm:$0xff]  ;;  %v325_v33 = vld [vmem:[#allocation8] sm:$0xff]  ;;  %v326_v34 = vld [vmem:[#allocation8 + $0x8] sm:$0xff] }
  0x52   :  { %v925_v32 = vpack.c.bf16 %v216_v31, %v215_v30  ;;  %v327_v35 = vld [vmem:[#allocation8 + $0x10] sm:$0xff]  ;;  %v929_v36 = vpack.c.bf16 %v326_v34, %v325_v33  ;;  %v328_v37 = vld [vmem:[#allocation8 + $0x18] sm:$0xff]  ;;  %v329_v39 = vld [vmem:[#allocation8 + $0x20] sm:$0xff] }
  0x53   :  { %904 = vmatpush3.bf16.msra.mxu1 %v901_v10  ;;  %v933_v38 = vpack.c.bf16 %v328_v37, %v327_v35  ;;  %v330_v40 = vld [vmem:[#allocation8 + $0x28] sm:$0xff]  ;;  %v331_v42 = vld [vmem:[#allocation8 + $0x30] sm:$0xff]  ;;  %v332_v43 = vld [vmem:[#allocation8 + $0x38] sm:$0xff] }
  0x54   :  { %785 = vmatmul.mubr.msk.f32.gmra.mrb[2].mxu0 %vm87_vm0, %v1226_v14  ;;  %906 = vmatprep.subr.bf16.mxu1 %v905_v15  ;;  %v937_v41 = vpack.c.bf16 %v330_v40, %v329_v39  ;;  %v941_v44 = vpack.c.bf16 %v332_v43, %v331_v42  ;;  %v333_v45 = vld [vmem:[#allocation8 + $0x40] sm:$0xff]  ;;  %v334_v46 = vld [vmem:[#allocation8 + $0x48] sm:$0xff]  ;;  %v335_v48 = vld [vmem:[#allocation8 + $0x50] sm:$0xff] }
  0x55   :  { %787 = vmatprep.mubr.msk.f32.mxu0 %vm87_vm0, %v1228_v16  ;;  %930 = vmatprep.subr.bf16.mxu0 %v929_v36  ;;  %v945_v47 = vpack.c.bf16 %v334_v46, %v333_v45  ;;  %v336_v49 = vld [vmem:[#allocation8 + $0x58] sm:$0xff]  ;;  %v337_v51 = vld [vmem:[#allocation8 + $0x60] sm:$0xff]  ;;  %v338_v52 = vld [vmem:[#allocation8 + $0x68] sm:$0xff] }
  0x56   :  { %932 = vmatpush3.bf16.msra.mxu0 %v929_v36  ;;  %v949_v50 = vpack.c.bf16 %v336_v49, %v335_v48  ;;  %v953_v53 = vpack.c.bf16 %v338_v52, %v337_v51  ;;  %v339_v60 = vld [vmem:[#allocation8 + $0x70] sm:$0xff]  ;;  %v340_v61 = vld [vmem:[#allocation8 + $0x78] sm:$0xff]  ;;  %v705_v63 = vld [vmem:[%s1274_s3] ss:$0 sm:$0xff] }
  0x57   :  { %908 = vmatpush3.bf16.msra.mxu1 %v905_v15  ;;  %934 = vmatprep.subr.bf16.mxu0 %v933_v38  ;;  %v957_v62 = vpack.c.bf16 %v340_v61, %v339_v60 }
  0x58   :  { %788 = vmatmul.mubr.msk.f32.gmra.mrb[4].mxu0 %vm87_vm0, %v1234_v19  ;;  %910 = vmatprep.subr.bf16.mxu1 %v909_v20 }
  0x5a   :  { %936 = vmatpush3.bf16.msra.mxu0 %v933_v38 }
  0x5b   :  { %912 = vmatpush3.bf16.msra.mxu1 %v909_v20  ;;  %938 = vmatprep.subr.bf16.mxu0 %v937_v41 }
  0x5c   :  { %914 = vmatprep.subr.bf16.mxu1 %v913_v23 }
  0x5e   :  { %940 = vmatpush3.bf16.msra.mxu0 %v937_v41 }
  0x5f   :  { %916 = vmatpush3.bf16.msra.mxu1 %v913_v23  ;;  %942 = vmatprep.subr.bf16.mxu0 %v941_v44 }
  0x60   :  { %918 = vmatprep.subr.bf16.mxu1 %v917_v26 }
  0x62   :  { %944 = vmatpush3.bf16.msra.mxu0 %v941_v44 }
  0x63   :  { %920 = vmatpush3.bf16.msra.mxu1 %v917_v26  ;;  %946 = vmatprep.subr.bf16.mxu0 %v945_v47 }
  0x64   :  { %922 = vmatprep.subr.bf16.mxu1 %v921_v29 }
  0x66   :  { %948 = vmatpush3.bf16.msra.mxu0 %v945_v47 }
  0x67   :  { %924 = vmatpush3.bf16.msra.mxu1 %v921_v29  ;;  %950 = vmatprep.subr.bf16.mxu0 %v949_v50 }
  0x68   :  { %926 = vmatprep.subr.bf16.mxu1 %v925_v32 }
  0x6a   :  { %952 = vmatpush3.bf16.msra.mxu0 %v949_v50 }
  0x6b   :  { %928 = vmatpush3.bf16.msra.mxu1 %v925_v32  ;;  %954 = vmatprep.subr.bf16.mxu0 %v953_v53 }
  0x6e   :  { %956 = vmatpush3.bf16.msra.mxu0 %v953_v53 }
  0x6f   :  { %958 = vmatprep.subr.bf16.mxu0 %v957_v62 }
  0x72   :  { %960 = vmatpush3.bf16.msra.mxu0 %v957_v62 }
 0x123   :  { %v783_v54 = vpop.f32.mrb[0].mxu0 }
 0x124   :  { %v172_v55 = vpop.f32.mrb[1].mxu0 }
 0x125   :  { %822 = vmatprep.mubr.f32.mxu1 %v172_v55 }
 0x126   :  { %823 = vmatmul.mubr.f32.vlgmr.msra.gmra.mrb[0].mxu1 %v783_v54 }
 0x127   :  { %v786_v56 = vpop.f32.mrb[2].mxu0 }
 0x128   :  { %v182_v57 = vpop.f32.mrb[3].mxu0 }
 0x129   :  { %825 = vmatprep.mubr.f32.mxu1 %v182_v57 }
 0x12a   :  { %826 = vmatmul.mubr.f32.gmra.mrb[2].mxu1 %v786_v56 }
 0x12b   :  { %v789_v58 = vpop.f32.mrb[4].mxu0 }
 0x12c   :  { %v192_v59 = vpop.f32.mrb[5].mxu0 }
 0x12d   :  { %828 = vmatprep.mubr.f32.mxu1 %v192_v59 }
 0x12e   :  { %829 = vmatmul.mubr.f32.gmra.mrb[4].mxu1 %v789_v58 }
 0x12f   :  { %876 = vmatprep.mubr.msk.f32.mxu1 %vm87_vm0, %v1214_v2 }
 0x1f9   :  { %v824_v0 = vpop.f32.mrb[0].mxu1 }
 0x1fa   :  { %v296_v1 = vadd.f32 %v824_v0, %v705_v63  ;;  %v290_v3 = vpop.f32.mrb[1].mxu1 }
 0x1fb   :  { %v291_v4 = vadd.f32 %v705_v63, %v290_v3 }
 0x1fc   :  { %v320_v7 = vmax.f32 %v296_v1, 0.0 }
 0x1fd   :  { %v319_v5 = vmax.f32 %v291_v4, 0.0  ;;  %v827_v6 = vpop.f32.mrb[2].mxu1 }
 0x1fe   :  { %v306_v9 = vadd.f32 %v827_v6, %v705_v63  ;;  %v300_v10 = vpop.f32.mrb[3].mxu1 }
 0x1ff   :  { %v301_v12 = vadd.f32 %v705_v63, %v300_v10  ;;  %863 = vmatprep.mubr.f32.mxu0 %v319_v5 }
 0x200   :  { %864 = vmatmul.mubr.f32.vlgmr.msra.gmra.mrb[6].mxu0 %v320_v7  ;;  %v322_v15 = vmax.f32 %v306_v9, 0.0 }
 0x201   :  { %v321_v2 = vmax.f32 %v301_v12, 0.0  ;;  %v830_v13 = vpop.f32.mrb[4].mxu1 }
 0x202   :  { %v316_v17 = vadd.f32 %v830_v13, %v705_v63  ;;  %v310_v18 = vpop.f32.mrb[5].mxu1 }
 0x203   :  { %v311_v20 = vadd.f32 %v705_v63, %v310_v18  ;;  %866 = vmatprep.mubr.f32.mxu0 %v321_v2 }
 0x204   :  { %867 = vmatmul.mubr.f32.gmra.mrb[8].mxu0 %v322_v15  ;;  %v324_v22 = vmax.f32 %v316_v17, 0.0 }
 0x205   :  { %v323_v21 = vmax.f32 %v311_v20, 0.0 }
 0x207   :  { %869 = vmatprep.mubr.f32.mxu0 %v323_v21 }
 0x208   :  { %870 = vmatmul.mubr.f32.gmra.mrb[10].mxu0 %v324_v22 }
 0x209   :  { %883 = vmatprep.mubr.msk.f32.mxu0 %vm87_vm0, %v1220_v11  ;;  %v712_v11 = vld [vmem:[%s1276_s5] ss:$0 sm:$0xff]  ;;  %s1068_s5 = scalar_lea.vmem %s686_s25, 768 }
 0x20a   :  { %p1069_p4 = scmp.ne.s32.totalorder %s686_s25, %s1068_s5  ;;  %p1074_p6 = scmp.lt.s32.totalorder %s1068_s5, %s1068_s5 }
 0x20c   :  { %p1075_p7 = por %p1074_p6, %p1073_p5 }
 0x20e   :  { %p1076_p8 = pnand %p1075_p7, %p1069_p4 }
 0x2d3   :  { %v865_v23 = vpop.f32.mrb[6].mxu0 }
 0x2d4   :  { %v407_v24 = vpop.f32.mrb[7].mxu0 }
 0x2d5   :  { %v961_v25 = vpack.c.bf16 %v865_v23, %v407_v24 }
 0x2d7   :  { %v868_v26 = vpop.f32.mrb[8].mxu0  ;;  %962 = vmatprep.subr.bf16.mxu1 %v961_v25 }
 0x2d8   :  { %v417_v27 = vpop.f32.mrb[9].mxu0  ;;  %964 = vmatpush3.bf16.msra.mxu1 %v961_v25 }
 0x2d9   :  { %v965_v28 = vpack.c.bf16 %v868_v26, %v417_v27 }
 0x2db   :  { %v871_v29 = vpop.f32.mrb[10].mxu0  ;;  %966 = vmatprep.subr.bf16.mxu0 %v965_v28  ;;  %877 = vmatmul.mubr.msk.f32.vlgmr.msra.gmra.mrb[6].mxu1 %vm87_vm0, %v1218_v8 }
 0x2dc   :  { %v427_v30 = vpop.f32.mrb[11].mxu0  ;;  %968 = vmatpush3.bf16.msra.mxu0 %v965_v28  ;;  %890 = vmatprep.mubr.msk.f32.mxu1 %vm87_vm0, %v1228_v16 }
 0x2dd   :  { %v969_v31 = vpack.c.bf16 %v871_v29, %v427_v30 }
 0x2df   :  { %970 = vmatprep.subr.bf16.mxu1 %v969_v31  ;;  %884 = vmatmul.mubr.msk.f32.vlgmr.msra.gmra.mrb[12].mxu0 %vm87_vm0, %v1226_v14 }
 0x2e0   :  { %972 = vmatpush3.bf16.msra.mxu1 %v969_v31 }
 0x2e3   :  { %891 = vmatmul.mubr.msk.f32.vlgmr.msra.gmra.mrb[8].mxu1 %vm87_vm0, %v1234_v19 }
 0x3ae   :  { %v878_v32 = vpop.f32.mrb[6].mxu1 }
 0x3af   :  { %v669_v8 = vadd.f32 %v878_v32, %v712_v11  ;;  %v502_v33 = vpop.f32.mrb[7].mxu1 }
 0x3b0   :  { %v668_v34 = vadd.f32 %v712_v11, %v502_v33 }
 0x3b1   :  { %675 = vst [vmem:[#allocation10 + $0x8] sm:$0xff] %v669_v8 }
 0x3b2   :  { %674 = vst [vmem:[#allocation10] sm:$0xff] %v668_v34  ;;  %v885_v16 = vpop.f32.mrb[12].mxu0 }
 0x3b3   :  { %v671_v35 = vadd.f32 %v885_v16, %v712_v11  ;;  %v577_v36 = vpop.f32.mrb[13].mxu0 }
 0x3b4   :  { %v670_v37 = vadd.f32 %v712_v11, %v577_v36 }
 0x3b5   :  { %677 = vst [vmem:[#allocation10 + $0x18] sm:$0xff] %v671_v35 }
 0x3b6   :  { %v892_v14 = vpop.f32.mrb[8].mxu1  ;;  %676 = vst [vmem:[#allocation10 + $0x10] sm:$0xff] %v670_v37 }
 0x3b7   :  { %v673_v19 = vadd.f32 %v892_v14, %v712_v11  ;;  %v652_v38 = vpop.f32.mrb[9].mxu1 }
 0x3b8   :  { %v672_v39 = vadd.f32 %v712_v11, %v652_v38 }
 0x3b9   :  { %679 = vst [vmem:[#allocation10 + $0x28] sm:$0xff] %v673_v19 }
 0x3ba   :  { %678 = vst [vmem:[#allocation10 + $0x20] sm:$0xff] %v672_v39 }
 0x3bb   :  { %1079 = shalt.err (!%p1076_p8)
}
 0x3bc   :  { %s1080_s28 = scalar_lea.hbm %s1277_s6, 768 }
 0x3bd   :  { %p1081_p9 = scmp.ne.s32.totalorder %s1277_s6, %s1080_s28  ;;  %p1084_p10 = scmp.lt.u32.totalorder %s1080_s28, %s1277_s6 }
 0x3bf   :  { %p1086_p11 = pnand %p1084_p10, %p1081_p9 }
 0x3c1   :  { %1089 = shalt.err (!%p1086_p11)
}
 0x3c2   :  { %691 = dma.vmem_to_hbm [thread:$0]  %s686_s25, 768, %s1277_s6, [#allocation4], %s1100_s9, %s1100_s9, %s1101_s10  }
 0x3c3   :  { %1096 = dma.done.wait [#allocation4], 768  }
 0x3c4   :  { %1097 = vsyncadd [#allocation4], 4294966528 }
 0x3c5   :  { %695 = vsyncpa [#allocation3], 1 }
 0x3c6   :  { %696 = vsyncpa [#allocation6], 1 }
 0x3c7   :  { %697 = vsyncpa [#allocation9], 1 }
 0x3c8   :  { %698 = vsyncpa [#allocation4], 1 }

</bundles_post_ra>
